<compile_context>
chip_gen: v7x
topology: tpu7x:2x2x1
jax: 0.10.0
libtpu: 0.0.40
codegen_flags: <defaults>
</compile_context>

<pallas_src>
import jax
import jax.numpy as jnp
from jax.experimental import pallas as pl
from jax.experimental.pallas import tpu as pltpu

HIDDEN_PAD = 128  # hidden dim 100 padded to one full lane width


def critic_kernel(xT_ref, w1t_ref, b1_ref, w2_ref, b2_ref, out_ref):
    # xT_ref : (3, Bp)   VMEM  -- features on sublanes, batch on lanes
    # w1t_ref: (128, 3)  VMEM  -- fc weight, transposed + zero-padded hidden dim
    # b1_ref : (128, 1)  VMEM  -- fc bias (padded)
    # w2_ref : (128, 1)  VMEM  -- v_head weight (padded)
    # b2_ref : (1, 1)    SMEM  -- v_head bias (scalar)
    # out_ref: (1, Bp)   VMEM  -- lane-dense value row
    xT = xT_ref[...]
    w1t = w1t_ref[...]

    # fc: three rank-1 VPU updates (K=3 is far too small for the MXU), then ReLU.
    h = (w1t[:, 0:1] * xT[0:1, :]
         + w1t[:, 1:2] * xT[1:2, :]
         + w1t[:, 2:3] * xT[2:3, :]
         + b1_ref[...])                      # (128, Bp)
    h = jnp.maximum(h, 0.0)

    # v_head: per-hidden scale (VPU) + sublane reduction (XLU) + scalar bias (SMEM).
    v = jnp.sum(h * w2_ref[...], axis=0, keepdims=True) + b2_ref[0, 0]  # (1, Bp)
    out_ref[...] = v.astype(out_ref.dtype)


def prepare_critic_params(w1, b1, w2, b2, hidden_pad=HIDDEN_PAD):
    """One-time repack of torch-style Linear params into kernel layout.

    w1: (3, 100)  (in, out)   b1: (100,)
    w2: (100, 1)  (in, out)   b2: (1,)
    """
    h = w1.shape[1]
    w1t = jnp.zeros((hidden_pad, 3), jnp.float32).at[:h, :].set(w1.T)
    b1p = jnp.zeros((hidden_pad, 1), jnp.float32).at[:h, 0].set(b1.reshape(-1))
    w2p = jnp.zeros((hidden_pad, 1), jnp.float32).at[:h, 0].set(w2.reshape(-1))
    b2p = jnp.asarray(b2, jnp.float32).reshape(1, 1)
    return w1t, b1p, w2p, b2p


def critic_forward(x, params):
    """x: (B, 3) float32 -> (B, 1) state values."""
    w1t, b1p, w2p, b2p = params
    B = x.shape[0]
    Bp = ((B + 127) // 128) * 128  # pad batch to a full lane width (unmasked stores)

    # Layout plumbing: batch onto the lane axis, zero-pad to Bp.
    xT = jnp.zeros((3, Bp), jnp.float32).at[:, :B].set(x.astype(jnp.float32).T)

    out = pl.pallas_call(
        critic_kernel,
        out_shape=jax.ShapeDtypeStruct((1, Bp), jnp.float32),
        in_specs=[
            pl.BlockSpec(memory_space=pltpu.MemorySpace.VMEM),  # xT
            pl.BlockSpec(memory_space=pltpu.MemorySpace.VMEM),  # w1t
            pl.BlockSpec(memory_space=pltpu.MemorySpace.VMEM),  # b1
            pl.BlockSpec(memory_space=pltpu.MemorySpace.VMEM),  # w2
            pl.BlockSpec(memory_space=pltpu.MemorySpace.SMEM),  # b2 scalar
        ],
        out_specs=pl.BlockSpec(memory_space=pltpu.MemorySpace.VMEM),
    )(xT, w1t, b1p, w2p, b2p)

    return out[0, :B].reshape(B, 1)


def init_linear(key, fan_in, fan_out):
    """Deterministic init mimicking torch.nn.Linear default U(-1/sqrt(fan_in), +)."""
    kw, kb = jax.random.split(key)
    bound = 1.0 / jnp.sqrt(jnp.float32(fan_in))
    w = jax.random.uniform(kw, (fan_in, fan_out), jnp.float32, -bound, bound)  # (in, out)
    b = jax.random.uniform(kb, (fan_out,), jnp.float32, -bound, bound)
    return w, b


if __name__ == "__main__":
    key = jax.random.PRNGKey(0)
    k_x, k_fc, k_vh = jax.random.split(key, 3)

    B = 8
    x = jax.random.normal(k_x, (B, 3), jnp.float32)

    w1, b1 = init_linear(k_fc, 3, 100)   # fc: Linear(3, 100)
    w2, b2 = init_linear(k_vh, 100, 1)   # v_head: Linear(100, 1)

    params = prepare_critic_params(w1, b1, w2, b2)
    out = jax.block_until_ready(critic_forward(x, params))

    # Reference in plain JAX (same math as the PyTorch module).
    ref = jnp.maximum(x @ w1 + b1[None, :], 0.0) @ w2 + b2[None, :]
    assert out.shape == (B, 1)
    assert jnp.allclose(out, ref, atol=1e-5, rtol=1e-5)

    print("KERNEL_OK")
</pallas_src>

<mosaic_0001>
module attributes {stable_mosaic.version = 11 : i64} {
  func.func @critic_kernel(%arg0: memref<3x128xf32, #tpu.memory_space<vmem>>, %arg1: memref<128x3xf32, #tpu.memory_space<vmem>>, %arg2: memref<128x1xf32, #tpu.memory_space<vmem>>, %arg3: memref<128x1xf32, #tpu.memory_space<vmem>>, %arg4: memref<1x1xf32, #tpu.memory_space<smem>>, %arg5: memref<1x128xf32, #tpu.memory_space<vmem>>) attributes {dimension_semantics = [], scalar_prefetch = 0 : i64, scratch_operands = 0 : i64, tpu.core_type = #tpu.core_type<tc>} {
    %c0 = arith.constant 0 : index
    %c0_0 = arith.constant 0 : index
    %0 = vector.load %arg0[%c0, %c0_0] : memref<3x128xf32, #tpu.memory_space<vmem>>, vector<3x128xf32>
    %c0_1 = arith.constant 0 : index
    %c0_2 = arith.constant 0 : index
    %1 = vector.load %arg1[%c0_1, %c0_2] : memref<128x3xf32, #tpu.memory_space<vmem>>, vector<128x3xf32>
    %2 = vector.extract_strided_slice %1 {offsets = [0, 0], sizes = [128, 1], strides = [1, 1]} : vector<128x3xf32> to vector<128x1xf32>
    %3 = vector.extract_strided_slice %0 {offsets = [0, 0], sizes = [1, 128], strides = [1, 1]} : vector<3x128xf32> to vector<1x128xf32>
    %4 = vector.broadcast %2 : vector<128x1xf32> to vector<128x128xf32>
    %5 = vector.broadcast %3 : vector<1x128xf32> to vector<128x128xf32>
    %6 = arith.mulf %4, %5 : vector<128x128xf32>
    %7 = vector.extract_strided_slice %1 {offsets = [0, 1], sizes = [128, 1], strides = [1, 1]} : vector<128x3xf32> to vector<128x1xf32>
    %8 = vector.extract_strided_slice %0 {offsets = [1, 0], sizes = [1, 128], strides = [1, 1]} : vector<3x128xf32> to vector<1x128xf32>
    %9 = vector.broadcast %7 : vector<128x1xf32> to vector<128x128xf32>
    %10 = vector.broadcast %8 : vector<1x128xf32> to vector<128x128xf32>
    %11 = arith.mulf %9, %10 : vector<128x128xf32>
    %12 = arith.addf %6, %11 : vector<128x128xf32>
    %13 = vector.extract_strided_slice %1 {offsets = [0, 2], sizes = [128, 1], strides = [1, 1]} : vector<128x3xf32> to vector<128x1xf32>
    %14 = vector.extract_strided_slice %0 {offsets = [2, 0], sizes = [1, 128], strides = [1, 1]} : vector<3x128xf32> to vector<1x128xf32>
    %15 = vector.broadcast %13 : vector<128x1xf32> to vector<128x128xf32>
    %16 = vector.broadcast %14 : vector<1x128xf32> to vector<128x128xf32>
    %17 = arith.mulf %15, %16 : vector<128x128xf32>
    %18 = arith.addf %12, %17 : vector<128x128xf32>
    %c0_3 = arith.constant 0 : index
    %c0_4 = arith.constant 0 : index
    %19 = vector.load %arg2[%c0_3, %c0_4] : memref<128x1xf32, #tpu.memory_space<vmem>>, vector<128x1xf32>
    %20 = vector.broadcast %19 : vector<128x1xf32> to vector<128x128xf32>
    %21 = arith.addf %18, %20 : vector<128x128xf32>
    %cst = arith.constant 0.000000e+00 : f32
    %22 = vector.broadcast %cst : f32 to vector<128x128xf32>
    %23 = arith.maximumf %21, %22 : vector<128x128xf32>
    %c0_5 = arith.constant 0 : index
    %c0_6 = arith.constant 0 : index
    %24 = vector.load %arg3[%c0_5, %c0_6] : memref<128x1xf32, #tpu.memory_space<vmem>>, vector<128x1xf32>
    %25 = vector.broadcast %24 : vector<128x1xf32> to vector<128x128xf32>
    %26 = arith.mulf %23, %25 : vector<128x128xf32>
    %cst_7 = arith.constant dense<0.000000e+00> : vector<128xf32>
    %27 = vector.multi_reduction <add>, %26, %cst_7 [0] : vector<128x128xf32> to vector<128xf32>
    %28 = vector.shape_cast %27 : vector<128xf32> to vector<1x128xf32>
    %c0_8 = arith.constant 0 : index
    %c0_9 = arith.constant 0 : index
    %29 = memref.load %arg4[%c0_8, %c0_9] : memref<1x1xf32, #tpu.memory_space<smem>>
    %30 = vector.broadcast %29 : f32 to vector<1x128xf32>
    %31 = arith.addf %28, %30 : vector<1x128xf32>
    %c0_10 = arith.constant 0 : index
    %c0_11 = arith.constant 0 : index
    %32 = vector.load %arg5[%c0_10, %c0_11] : memref<1x128xf32, #tpu.memory_space<vmem>>, vector<1x128xf32>
    tpu.vector_store %arg5[%c0_10, %c0_11], %31 {strides = array<i32>} : memref<1x128xf32, #tpu.memory_space<vmem>>, vector<1x128xf32>,
    return
  }
}

</mosaic_0001>

<bundles_post_ra>
// kernel: tpu_custom_call.1
= control target key start
LH: loop header
LB: loop body
LE: loop exit
PB: predicated region body
PF: predicated region fallthrough
CT: control target
= control target key end

     0   :  { %v653_v2 = vmov 1   ;;  %v654_v3 = vmov 0   ;;  %s979_s0 = inlined_call_operand.vmem [shape: f32[3,128], index: 0, kind: input, shape index: {}]   ;;  %s980_s1 = inlined_call_operand.vmem [shape: f32[128,3], index: 1, kind: input, shape index: {}]   ;;  %s981_s2 = inlined_call_operand.vmem [shape: f32[128,1], index: 2, kind: input, shape index: {}]   ;;  %s982_s3 = inlined_call_operand.vmem [shape: f32[128,1], index: 3, kind: input, shape index: {}]   ;;  %s983_s4 = inlined_call_operand.<no memory space> [shape: f32[1,1], index: 4, kind: input, shape index: {}]   ;;  %s984_s5 = inlined_call_operand.hbm [shape: f32[1,128], index: 5, kind: output, shape index: {}]  }
   0x1   :  { %v25_v0 = vld [vmem:[%s980_s1 + $0x10] sm:$0xff]  ;;  %v23_v1 = vld [vmem:[%s980_s1] sm:$0xff]  ;;  %623 = vset.pattern.permute.xlu0 %v653_v2  ;;  %622 = vset.pattern.permute.xlu1 %v654_v3  ;;  %v26_v4 = vld [vmem:[%s980_s1 + $0x18] sm:$0xff] }
   0x2   :  { %51 = vperm.xlu1 %622, %v25_v0   ;;  %140 = vperm.xlu0 %623, %v23_v1   ;;  %v28_v5 = vld [vmem:[%s980_s1 + $0x28] sm:$0xff]  ;;  %v30_v6 = vld [vmem:[%s980_s1 + $0x38] sm:$0xff] }
   0x6   :  { %56 = vperm.xlu1 %622, %v26_v4   ;;  %152 = vperm.xlu0 %623, %v26_v4  }
   0xa   :  { %66 = vperm.xlu1 %622, %v28_v5   ;;  %160 = vperm.xlu0 %623, %v28_v5  }
   0xb   :  { %11 = vsyncpa [#allocation4], 0  ;;  %v32_v7 = vld [vmem:[%s980_s1 + $0x48] sm:$0xff]  ;;  %v34_v8 = vld [vmem:[%s980_s1 + $0x58] sm:$0xff]  ;;  %v655_v12 = vmov 2   ;;  %v119_v31 = vlaneseq  ;;  %s656_s11 = smov [#allocation3]  }
   0xc   :  { %v36_v9 = vld [vmem:[%s980_s1 + $0x68] sm:$0xff]  ;;  %v38_v10 = vld [vmem:[%s980_s1 + $0x78] sm:$0xff]  ;;  %v27_v13 = vld [vmem:[%s980_s1 + $0x20] sm:$0xff]  ;;  %s610_s12 = sshll.u32 %s656_s11, 4  ;;  %s611_s12 = int_to_ptr.vmem [resolvable:$true] %s610_s12 }
   0xd   :  { %v24_v11 = vld [vmem:[%s980_s1 + $0x8] sm:$0xff]  ;;  %v29_v14 = vld [vmem:[%s980_s1 + $0x30] sm:$0xff]  ;;  %v31_v15 = vld [vmem:[%s980_s1 + $0x40] sm:$0xff]  ;;  %v780_v34 = vshrl.u32 %v119_v31, 7  ;;  %s629_s13 = scalar_lea.vmem %s611_s12, 16  ;;  %s633_s14 = scalar_lea.vmem %s611_s12, 32 }
   0xe   :  { %76 = vperm.xlu1 %622, %v30_v6   ;;  %168 = vperm.xlu0 %623, %v30_v6   ;;  %v33_v16 = vld [vmem:[%s980_s1 + $0x50] sm:$0xff]  ;;  %v35_v17 = vld [vmem:[%s980_s1 + $0x60] sm:$0xff]  ;;  %v342_v20 = vld [vmem:[%s981_s2 + $0x18] sm:$0xff]  ;;  %p630_p0 = scmp.ne.s32.totalorder %s611_s12, %s629_s13  ;;  %p634_p1 = scmp.lt.s32.totalorder %s611_s12, %s611_s12 }
   0xf   :  { %v37_v18 = vld [vmem:[%s980_s1 + $0x70] sm:$0xff]  ;;  %v339_v19 = vld [vmem:[%s981_s2] sm:$0xff]  ;;  %v468_v21 = vld [vmem:[%s982_s3 + $0x8] sm:$0xff]  ;;  %v205_v37 = vsub.s32 1, %v780_v34  ;;  %v121_v38 = vsub.s32 0, %v780_v34  ;;  %p635_p2 = scmp.lt.s32.totalorder %s633_s14, %s629_s13 }
  0x10   :  { %v340_v22 = vld [vmem:[%s981_s2 + $0x8] sm:$0xff]  ;;  %v469_v23 = vld [vmem:[%s982_s3 + $0x10] sm:$0xff]  ;;  %v470_v25 = vld [vmem:[%s982_s3 + $0x18] sm:$0xff] }
  0x11   :  { %v341_v24 = vld [vmem:[%s981_s2 + $0x10] sm:$0xff]  ;;  %v467_v26 = vld [vmem:[%s982_s3] sm:$0xff]  ;;  %v472_v29 = vld [vmem:[%s982_s3 + $0x28] sm:$0xff]  ;;  %p636_p3 = por %p635_p2, %p634_p1 }
  0x12   :  { %86 = vperm.xlu1 %622, %v32_v7   ;;  %176 = vperm.xlu0 %623, %v32_v7   ;;  %v471_v27 = vld [vmem:[%s982_s3 + $0x20] sm:$0xff]  ;;  %v344_v30 = vld [vmem:[%s981_s2 + $0x28] sm:$0xff]  ;;  %v473_v32 = vld [vmem:[%s982_s3 + $0x30] sm:$0xff] }
  0x13   :  { %v343_v28 = vld [vmem:[%s981_s2 + $0x20] sm:$0xff]  ;;  %v345_v33 = vld [vmem:[%s981_s2 + $0x30] sm:$0xff]  ;;  %v474_v35 = vld [vmem:[%s982_s3 + $0x38] sm:$0xff]  ;;  %p637_p4 = pnand %p636_p3, %p630_p0 }
  0x14   :  { %v346_v36 = vld [vmem:[%s981_s2 + $0x38] sm:$0xff]  ;;  %v795_v40 = vld [vmem:[%s979_s0] sm:$0x7]  ;;  %v476_v48 = vld [vmem:[%s982_s3 + $0x48] sm:$0xff] }
  0x15   :  { %v475_v42 = vld [vmem:[%s982_s3 + $0x40] sm:$0xff]  ;;  %v803_v43 = vrot.slane %v795_v40, %v205_v37  ;;  %v809_v45 = vrot.slane %v795_v40, %v121_v38  ;;  %v348_v51 = vld [vmem:[%s981_s2 + $0x48] sm:$0xff]  ;;  %v477_v55 = vld [vmem:[%s982_s3 + $0x50] sm:$0xff] }
  0x16   :  { %96 = vperm.xlu1 %622, %v34_v8   ;;  %184 = vperm.xlu0 %623, %v34_v8   ;;  %v347_v44 = vld [vmem:[%s981_s2 + $0x40] sm:$0xff]  ;;  %v349_v58 = vld [vmem:[%s981_s2 + $0x50] sm:$0xff]  ;;  %v478_v62 = vld [vmem:[%s982_s3 + $0x58] sm:$0xff] }
  0x1a   :  { %106 = vperm.xlu1 %622, %v36_v9   ;;  %192 = vperm.xlu0 %623, %v36_v9  }
  0x1e   :  { %116 = vperm.xlu1 %622, %v38_v10   ;;  %200 = vperm.xlu0 %623, %v38_v10  }
  0x22   :  { %624 = vset.pattern.permute.xlu1 %v653_v2  ;;  %626 = vset.pattern.permute.xlu0 %v655_v12 }
  0x23   :  { %144 = vperm.xlu1 %624, %v24_v11   ;;  %244 = vperm.xlu0 %626, %v24_v11  }
  0x27   :  { %148 = vperm.xlu1 %624, %v25_v0   ;;  %256 = vperm.xlu0 %626, %v27_v13  }
  0x2b   :  { %156 = vperm.xlu1 %624, %v27_v13   ;;  %264 = vperm.xlu0 %626, %v29_v14  }
  0x2f   :  { %164 = vperm.xlu1 %624, %v29_v14   ;;  %272 = vperm.xlu0 %626, %v31_v15  }
  0x33   :  { %172 = vperm.xlu1 %624, %v31_v15   ;;  %280 = vperm.xlu0 %626, %v33_v16  }
  0x37   :  { %180 = vperm.xlu1 %624, %v33_v16   ;;  %288 = vperm.xlu0 %626, %v35_v17  }
  0x3b   :  { %188 = vperm.xlu1 %624, %v35_v17   ;;  %296 = vperm.xlu0 %626, %v37_v18  }
  0x3f   :  { %196 = vperm.xlu1 %624, %v37_v18   ;;  %627 = vset.pattern.permute.xlu0 %v654_v3 }
  0x40   :  { %41 = vperm.xlu0 %627, %v23_v1  }
  0x43   :  { %625 = vset.pattern.permute.xlu1 %v655_v12  ;;  %v480_v12 = vld [vmem:[%s982_s3 + $0x68] sm:$0xff] }
  0x44   :  { %240 = vperm.xlu1 %625, %v23_v1   ;;  %46 = vperm.xlu0 %627, %v24_v11   ;;  %v350_v1 = vld [vmem:[%s981_s2 + $0x58] sm:$0xff] }
  0x48   :  { %248 = vperm.xlu1 %625, %v25_v0   ;;  %61 = vperm.xlu0 %627, %v27_v13  }
  0x4c   :  { %252 = vperm.xlu1 %625, %v26_v4   ;;  %71 = vperm.xlu0 %627, %v29_v14  }
  0x50   :  { %260 = vperm.xlu1 %625, %v28_v5   ;;  %81 = vperm.xlu0 %627, %v31_v15   ;;  %v479_v5 = vld [vmem:[%s982_s3 + $0x60] sm:$0xff]  ;;  %v352_v15 = vld [vmem:[%s981_s2 + $0x68] sm:$0xff] }
  0x54   :  { %268 = vperm.xlu1 %625, %v30_v6   ;;  %91 = vperm.xlu0 %627, %v33_v16  }
  0x58   :  { %276 = vperm.xlu1 %625, %v32_v7   ;;  %101 = vperm.xlu0 %627, %v35_v17  }
  0x5c   :  { %284 = vperm.xlu1 %625, %v34_v8   ;;  %111 = vperm.xlu0 %627, %v37_v18   ;;  %v351_v8 = vld [vmem:[%s981_s2 + $0x60] sm:$0xff] }
  0x60   :  { %292 = vperm.xlu1 %625, %v36_v9   ;;  %357 = vperm.xlu0 %627, %v339_v19   ;;  %v482_v19 = vld [vmem:[%s982_s3 + $0x78] sm:$0xff] }
  0x64   :  { %300 = vperm.xlu1 %625, %v38_v10   ;;  %372 = vperm.xlu0 %627, %v342_v20  }
  0x68   :  { %628 = vset.pattern.permute.xlu1 %v654_v3  ;;  %490 = vperm.xlu0 %627, %v468_v21  }
  0x69   :  { %362 = vperm.xlu1 %628, %v340_v22   ;;  %v353_v22 = vld [vmem:[%s981_s2 + $0x70] sm:$0xff] }
  0x6c   :  { %495 = vperm.xlu0 %627, %v469_v23  }
  0x6d   :  { %367 = vperm.xlu1 %628, %v341_v24  }
  0x70   :  { %500 = vperm.xlu0 %627, %v470_v25  }
  0x71   :  { %485 = vperm.xlu1 %628, %v467_v26  }
  0x74   :  { %505 = vperm.xlu0 %627, %v471_v27  }
  0x75   :  { %377 = vperm.xlu1 %628, %v343_v28   ;;  %v354_v28 = vld [vmem:[%s981_s2 + $0x78] sm:$0xff] }
  0x78   :  { %510 = vperm.xlu0 %627, %v472_v29  }
  0x79   :  { %382 = vperm.xlu1 %628, %v344_v30  }
  0x7c   :  { %515 = vperm.xlu0 %627, %v473_v32   ;;  %v481_v32 = vld [vmem:[%s982_s3 + $0x70] sm:$0xff] }
  0x7d   :  { %387 = vperm.xlu1 %628, %v345_v33  }
  0x80   :  { %520 = vperm.xlu0 %627, %v474_v35  }
  0x81   :  { %v790_v39 = vpop.permute.xlu1 %51  ;;  %392 = vperm.xlu1 %628, %v346_v36   ;;  %v797_v41 = vpop.permute.xlu0 %140 }
  0x82   :  { %v125_v36 = vmul.f32 %v809_v45, %v790_v39 }
  0x84   :  { %525 = vperm.xlu0 %627, %v475_v42  }
  0x85   :  { %v57_v46 = vpop.permute.xlu1 %56  ;;  %397 = vperm.xlu1 %628, %v347_v44   ;;  %v153_v47 = vpop.permute.xlu0 %152 }
  0x86   :  { %v126_v49 = vmul.f32 %v809_v45, %v57_v46  ;;  %v210_v50 = vmul.f32 %v803_v43, %v153_v47 }
  0x88   :  { %v819_v52 = vadd.f32 %v210_v50, %v126_v49  ;;  %530 = vperm.xlu0 %627, %v476_v48  }
  0x89   :  { %v67_v53 = vpop.permute.xlu1 %66  ;;  %402 = vperm.xlu1 %628, %v348_v51   ;;  %v161_v54 = vpop.permute.xlu0 %160 }
  0x8a   :  { %v128_v56 = vmul.f32 %v809_v45, %v67_v53  ;;  %v212_v57 = vmul.f32 %v803_v43, %v161_v54 }
  0x8c   :  { %v829_v59 = vadd.f32 %v212_v57, %v128_v56  ;;  %535 = vperm.xlu0 %627, %v477_v55   ;;  %v305_v55 = vsub.s32 2, %v780_v34 }
  0x8d   :  { %v77_v60 = vpop.permute.xlu1 %76  ;;  %407 = vperm.xlu1 %628, %v349_v58   ;;  %v169_v61 = vpop.permute.xlu0 %168 }
  0x8e   :  { %v130_v63 = vmul.f32 %v809_v45, %v77_v60  ;;  %v214_v0 = vmul.f32 %v803_v43, %v169_v61  ;;  %v888_v39 = vrot.slane %v795_v40, %v305_v55 }
  0x90   :  { %v839_v2 = vadd.f32 %v214_v0, %v130_v63  ;;  %540 = vperm.xlu0 %627, %v478_v62  }
  0x91   :  { %v87_v3 = vpop.permute.xlu1 %86  ;;  %412 = vperm.xlu1 %628, %v350_v1   ;;  %v177_v4 = vpop.permute.xlu0 %176 }
  0x92   :  { %v132_v6 = vmul.f32 %v809_v45, %v87_v3  ;;  %v216_v7 = vmul.f32 %v803_v43, %v177_v4 }
  0x94   :  { %v849_v9 = vadd.f32 %v216_v7, %v132_v6  ;;  %545 = vperm.xlu0 %627, %v479_v5  }
  0x95   :  { %v97_v10 = vpop.permute.xlu1 %96  ;;  %417 = vperm.xlu1 %628, %v351_v8   ;;  %v185_v11 = vpop.permute.xlu0 %184 }
  0x96   :  { %v134_v13 = vmul.f32 %v809_v45, %v97_v10  ;;  %v218_v14 = vmul.f32 %v803_v43, %v185_v11 }
  0x98   :  { %v859_v16 = vadd.f32 %v218_v14, %v134_v13  ;;  %550 = vperm.xlu0 %627, %v480_v12  }
  0x99   :  { %v107_v17 = vpop.permute.xlu1 %106  ;;  %422 = vperm.xlu1 %628, %v352_v15   ;;  %v193_v18 = vpop.permute.xlu0 %192 }
  0x9a   :  { %v136_v20 = vmul.f32 %v809_v45, %v107_v17  ;;  %v220_v21 = vmul.f32 %v803_v43, %v193_v18 }
  0x9c   :  { %v869_v23 = vadd.f32 %v220_v21, %v136_v20  ;;  %560 = vperm.xlu0 %627, %v482_v19  }
  0x9d   :  { %v117_v24 = vpop.permute.xlu1 %116  ;;  %427 = vperm.xlu1 %628, %v353_v22   ;;  %v201_v25 = vpop.permute.xlu0 %200 }
  0x9e   :  { %v138_v26 = vmul.f32 %v809_v45, %v117_v24  ;;  %v222_v27 = vmul.f32 %v803_v43, %v201_v25 }
  0xa0   :  { %v876_v29 = vadd.f32 %v222_v27, %v138_v26 }
  0xa1   :  { %432 = vperm.xlu1 %628, %v354_v28  }
  0xa2   :  { %v145_v30 = vpop.permute.xlu1 %144  ;;  %v245_v31 = vpop.permute.xlu0 %244 }
  0xa3   :  { %v208_v61 = vmul.f32 %v803_v43, %v145_v30  ;;  %v308_v63 = vmul.f32 %v888_v39, %v245_v31 }
  0xa5   :  { %555 = vperm.xlu1 %628, %v481_v32  }
  0xa6   :  { %v149_v33 = vpop.permute.xlu1 %148  ;;  %v257_v35 = vpop.permute.xlu0 %256 }
  0xa7   :  { %v209_v37 = vmul.f32 %v803_v43, %v149_v33  ;;  %v311_v6 = vmul.f32 %v888_v39, %v257_v35 }
  0xa9   :  { %v884_v38 = vadd.f32 %v209_v37, %v125_v36 }
  0xaa   :  { %v157_v42 = vpop.permute.xlu1 %156  ;;  %v265_v44 = vpop.permute.xlu0 %264 }
  0xab   :  { %v211_v4 = vmul.f32 %v803_v43, %v157_v42  ;;  %v313_v13 = vmul.f32 %v888_v39, %v265_v44 }
  0xae   :  { %v165_v46 = vpop.permute.xlu1 %164  ;;  %v273_v47 = vpop.permute.xlu0 %272 }
  0xaf   :  { %v213_v10 = vmul.f32 %v803_v43, %v165_v46  ;;  %v315_v21 = vmul.f32 %v888_v39, %v273_v47 }
  0xb2   :  { %v173_v48 = vpop.permute.xlu1 %172  ;;  %v281_v49 = vpop.permute.xlu0 %280 }
  0xb3   :  { %v215_v18 = vmul.f32 %v803_v43, %v173_v48  ;;  %v317_v30 = vmul.f32 %v888_v39, %v281_v49 }
  0xb6   :  { %v181_v50 = vpop.permute.xlu1 %180  ;;  %v289_v51 = vpop.permute.xlu0 %288 }
  0xb7   :  { %v217_v26 = vmul.f32 %v803_v43, %v181_v50  ;;  %v319_v42 = vmul.f32 %v888_v39, %v289_v51 }
  0xba   :  { %v189_v53 = vpop.permute.xlu1 %188  ;;  %v297_v54 = vpop.permute.xlu0 %296 }
  0xbb   :  { %v219_v35 = vmul.f32 %v803_v43, %v189_v53  ;;  %v321_v55 = vmul.f32 %v888_v39, %v297_v54 }
  0xbe   :  { %v197_v56 = vpop.permute.xlu1 %196 }
  0xbf   :  { %v42_v57 = vpop.permute.xlu0 %41  ;;  %v221_v48 = vmul.f32 %v803_v43, %v197_v56  ;;  %v207_v56 = vmul.f32 %v803_v43, %v797_v41 }
  0xc0   :  { %v123_v51 = vmul.f32 %v809_v45, %v42_v57 }
  0xc3   :  { %v241_v58 = vpop.permute.xlu1 %240  ;;  %v47_v60 = vpop.permute.xlu0 %46 }
  0xc4   :  { %v124_v62 = vmul.f32 %v809_v45, %v47_v60 }
  0xc6   :  { %v224_v0 = vadd.f32 %v208_v61, %v124_v62 }
  0xc7   :  { %v249_v1 = vpop.permute.xlu1 %248  ;;  %v62_v3 = vpop.permute.xlu0 %61 }
  0xc8   :  { %v127_v34 = vmul.f32 %v809_v45, %v62_v3  ;;  %v324_v5 = vadd.f32 %v308_v63, %v224_v0  ;;  %v307_v3 = vmul.f32 %v888_v39, %v241_v58 }
  0xca   :  { %v227_v40 = vadd.f32 %v211_v4, %v127_v34  ;;  %v223_v4 = vadd.f32 %v207_v56, %v123_v51  ;;  %v309_v34 = vmul.f32 %v888_v39, %v249_v1 }
  0xcb   :  { %v253_v7 = vpop.permute.xlu1 %252  ;;  %v72_v8 = vpop.permute.xlu0 %71 }
  0xcc   :  { %v129_v11 = vmul.f32 %v809_v45, %v72_v8  ;;  %v898_v12 = vadd.f32 %v311_v6, %v227_v40  ;;  %v310_v40 = vmul.f32 %v888_v39, %v253_v7  ;;  %v323_v8 = vadd.f32 %v307_v3, %v223_v4 }
  0xce   :  { %v229_v14 = vadd.f32 %v213_v10, %v129_v11 }
  0xcf   :  { %v261_v15 = vpop.permute.xlu1 %260  ;;  %v82_v17 = vpop.permute.xlu0 %81 }
  0xd0   :  { %v131_v19 = vmul.f32 %v809_v45, %v82_v17  ;;  %v903_v20 = vadd.f32 %v313_v13, %v229_v14  ;;  %v326_v14 = vadd.f32 %v310_v40, %v819_v52  ;;  %v312_v7 = vmul.f32 %v888_v39, %v261_v15 }
  0xd2   :  { %v231_v22 = vadd.f32 %v215_v18, %v131_v19 }
  0xd3   :  { %v906_v24 = vpop.permute.xlu1 %268  ;;  %v92_v25 = vpop.permute.xlu0 %91 }
  0xd4   :  { %v133_v27 = vmul.f32 %v809_v45, %v92_v25  ;;  %v910_v28 = vadd.f32 %v315_v21, %v231_v22  ;;  %v314_v15 = vmul.f32 %v888_v39, %v906_v24 }
  0xd6   :  { %v233_v31 = vadd.f32 %v217_v26, %v133_v27  ;;  %v330_v4 = vadd.f32 %v314_v15, %v839_v2 }
  0xd7   :  { %v913_v32 = vpop.permute.xlu1 %276  ;;  %v102_v33 = vpop.permute.xlu0 %101 }
  0xd8   :  { %v135_v36 = vmul.f32 %v809_v45, %v102_v33  ;;  %v917_v37 = vadd.f32 %v317_v30, %v233_v31 }
  0xda   :  { %v235_v44 = vadd.f32 %v219_v35, %v135_v36 }
  0xdb   :  { %v920_v46 = vpop.permute.xlu1 %284  ;;  %v112_v47 = vpop.permute.xlu0 %111 }
  0xdc   :  { %v137_v49 = vmul.f32 %v809_v45, %v112_v47  ;;  %v924_v50 = vadd.f32 %v319_v42, %v235_v44  ;;  %v325_v45 = vadd.f32 %v309_v34, %v884_v38  ;;  %v328_v42 = vadd.f32 %v312_v7, %v829_v59 }
  0xde   :  { %v237_v60 = vadd.f32 %v221_v48, %v137_v49 }
  0xdf   :  { %v927_v53 = vpop.permute.xlu1 %292  ;;  %v358_v61 = vpop.permute.xlu0 %357 }
  0xe0   :  { %v929_v62 = vadd.f32 %v321_v55, %v237_v60  ;;  %v435_v11 = vadd.f32 %v358_v61, %v323_v8 }
  0xe2   :  { %v451_v43 = vmax.f32 %v435_v11, 0.0 }
  0xe3   :  { %v932_v63 = vpop.permute.xlu1 %300  ;;  %v373_v0 = vpop.permute.xlu0 %372 }
  0xe4   :  { %v438_v58 = vadd.f32 %v373_v0, %v326_v14 }
  0xe6   :  { %v454_v25 = vmax.f32 %v438_v58, 0.0 }
  0xe7   :  { %v491_v54 = vpop.permute.xlu0 %490 }
  0xe8   :  { %v363_v6 = vpop.permute.xlu1 %362 }
  0xe9   :  { %v436_v10 = vadd.f32 %v363_v6, %v324_v5  ;;  %v316_v6 = vmul.f32 %v888_v39, %v913_v32 }
  0xeb   :  { %v496_v13 = vpop.permute.xlu0 %495  ;;  %v452_v17 = vmax.f32 %v436_v10, 0.0  ;;  %v332_v14 = vadd.f32 %v316_v6, %v849_v9 }
  0xec   :  { %v368_v57 = vpop.permute.xlu1 %367 }
  0xed   :  { %v437_v41 = vadd.f32 %v368_v57, %v325_v45  ;;  %v564_v21 = vmul.f32 %v491_v54, %v452_v17 }
  0xef   :  { %v453_v18 = vmax.f32 %v437_v41, 0.0  ;;  %v501_v19 = vpop.permute.xlu0 %500 }
  0xf0   :  { %v486_v1 = vpop.permute.xlu1 %485  ;;  %v566_v38 = vmul.f32 %v501_v19, %v454_v25 }
  0xf1   :  { %v563_v22 = vmul.f32 %v486_v1, %v451_v43  ;;  %v565_v5 = vmul.f32 %v496_v13, %v453_v18  ;;  %v318_v43 = vmul.f32 %v888_v39, %v920_v46 }
  0xf3   :  { %v579_v26 = vadd.f32 %v564_v21, %v563_v22  ;;  %v506_v27 = vpop.permute.xlu0 %505  ;;  %v334_v7 = vadd.f32 %v318_v43, %v859_v16 }
  0xf4   :  { %v378_v30 = vpop.permute.xlu1 %377 }
  0xf5   :  { %v580_v31 = vadd.f32 %v579_v26, %v565_v5  ;;  %v439_v52 = vadd.f32 %v378_v30, %v898_v12 }
  0xf7   :  { %v581_v33 = vadd.f32 %v580_v31, %v566_v38  ;;  %v455_v35 = vmax.f32 %v439_v52, 0.0  ;;  %v511_v36 = vpop.permute.xlu0 %510 }
  0xf8   :  { %v383_v44 = vpop.permute.xlu1 %382 }
  0xf9   :  { %v567_v47 = vmul.f32 %v506_v27, %v455_v35  ;;  %v440_v48 = vadd.f32 %v383_v44, %v328_v42  ;;  %v320_v27 = vmul.f32 %v888_v39, %v927_v53 }
  0xfb   :  { %v582_v49 = vadd.f32 %v581_v33, %v567_v47  ;;  %v456_v55 = vmax.f32 %v440_v48, 0.0  ;;  %v516_v60 = vpop.permute.xlu0 %515  ;;  %v322_v47 = vmul.f32 %v888_v39, %v932_v63 }
  0xfc   :  { %v388_v61 = vpop.permute.xlu1 %387 }
  0xfd   :  { %v568_v51 = vmul.f32 %v511_v36, %v456_v55  ;;  %v441_v0 = vadd.f32 %v388_v61, %v903_v20  ;;  %v336_v36 = vadd.f32 %v320_v27, %v869_v23 }
  0xff   :  { %v583_v56 = vadd.f32 %v582_v49, %v568_v51  ;;  %v457_v12 = vmax.f32 %v441_v0, 0.0  ;;  %v521_v3 = vpop.permute.xlu0 %520 }
 0x100   :  { %v393_v34 = vpop.permute.xlu1 %392 }
 0x101   :  { %v569_v59 = vmul.f32 %v516_v60, %v457_v12  ;;  %v442_v54 = vadd.f32 %v393_v34, %v330_v4 }
 0x103   :  { %v584_v40 = vadd.f32 %v583_v56, %v569_v59  ;;  %v458_v24 = vmax.f32 %v442_v54, 0.0  ;;  %v526_v8 = vpop.permute.xlu0 %525 }
 0x104   :  { %v398_v10 = vpop.permute.xlu1 %397 }
 0x105   :  { %v570_v11 = vmul.f32 %v521_v3, %v458_v24  ;;  %v443_v13 = vadd.f32 %v398_v10, %v910_v28 }
 0x107   :  { %v585_v45 = vadd.f32 %v584_v40, %v570_v11  ;;  %v459_v20 = vmax.f32 %v443_v13, 0.0  ;;  %v531_v57 = vpop.permute.xlu0 %530 }
 0x108   :  { %v403_v17 = vpop.permute.xlu1 %402 }
 0x109   :  { %v571_v2 = vmul.f32 %v526_v8, %v459_v20  ;;  %v444_v41 = vadd.f32 %v403_v17, %v332_v14 }
 0x10b   :  { %v586_v58 = vadd.f32 %v585_v45, %v571_v2  ;;  %v460_v32 = vmax.f32 %v444_v41, 0.0  ;;  %v536_v18 = vpop.permute.xlu0 %535 }
 0x10c   :  { %v408_v19 = vpop.permute.xlu1 %407 }
 0x10d   :  { %v572_v1 = vmul.f32 %v531_v57, %v460_v32  ;;  %v445_v21 = vadd.f32 %v408_v19, %v917_v37 }
 0x10f   :  { %v587_v22 = vadd.f32 %v586_v58, %v572_v1  ;;  %v461_v28 = vmax.f32 %v445_v21, 0.0  ;;  %v541_v25 = vpop.permute.xlu0 %540 }
 0x110   :  { %v413_v5 = vpop.permute.xlu1 %412 }
 0x111   :  { %v573_v9 = vmul.f32 %v536_v18, %v461_v28  ;;  %v446_v26 = vadd.f32 %v413_v5, %v334_v7 }
 0x113   :  { %v588_v30 = vadd.f32 %v587_v22, %v573_v9  ;;  %v462_v46 = vmax.f32 %v446_v26, 0.0  ;;  %v546_v33 = vpop.permute.xlu0 %545 }
 0x114   :  { %v418_v38 = vpop.permute.xlu1 %417 }
 0x115   :  { %v574_v31 = vmul.f32 %v541_v25, %v462_v46  ;;  %v447_v52 = vadd.f32 %v418_v38, %v924_v50  ;;  %v338_v50 = vadd.f32 %v322_v47, %v876_v29  ;;  %v601_v29 = vstv %s983_s4 }
 0x117   :  { %v589_v35 = vadd.f32 %v588_v30, %v574_v31  ;;  %v463_v37 = vmax.f32 %v447_v52, 0.0  ;;  %v551_v53 = vpop.permute.xlu0 %550 }
 0x118   :  { %v423_v42 = vpop.permute.xlu1 %422 }
 0x119   :  { %v575_v16 = vmul.f32 %v546_v33, %v463_v37  ;;  %v448_v44 = vadd.f32 %v423_v42, %v336_v36 }
 0x11b   :  { %v590_v48 = vadd.f32 %v589_v35, %v575_v16  ;;  %v464_v15 = vmax.f32 %v448_v44, 0.0  ;;  %v561_v4 = vpop.permute.xlu0 %560 }
 0x11c   :  { %v428_v49 = vpop.permute.xlu1 %427 }
 0x11d   :  { %v576_v55 = vmul.f32 %v551_v53, %v464_v15  ;;  %v449_v60 = vadd.f32 %v428_v49, %v929_v62 }
 0x11f   :  { %v591_v61 = vadd.f32 %v590_v48, %v576_v55  ;;  %v465_v56 = vmax.f32 %v449_v60, 0.0 }
 0x120   :  { %v433_v51 = vpop.permute.xlu1 %432 }
 0x121   :  { %v450_v0 = vadd.f32 %v433_v51, %v338_v50 }
 0x123   :  { %v466_v23 = vmax.f32 %v450_v0, 0.0 }
 0x124   :  { %v556_v12 = vpop.permute.xlu1 %555 }
 0x125   :  { %v577_v3 = vmul.f32 %v556_v12, %v465_v56  ;;  %v578_v34 = vmul.f32 %v561_v4, %v466_v23 }
 0x127   :  { %v592_v59 = vadd.f32 %v591_v61, %v577_v3 }
 0x129   :  { %v593_v39 = vadd.f32 %v592_v59, %v578_v34 }
 0x12b   :  { %v594_v63 = vrot.slane %v593_v39, 4 }
 0x12d   :  { %v595_v54 = vadd.f32 %v594_v63, %v593_v39 }
 0x12f   :  { %v596_v6 = vrot.slane %v595_v54, 2 }
 0x131   :  { %v597_v40 = vadd.f32 %v596_v6, %v595_v54 }
 0x133   :  { %v598_v24 = vrot.slane %v597_v40, 1 }
 0x135   :  { %v599_v62 = vadd.f32 %v598_v24, %v597_v40 }
 0x137   :  { %v602_v8 = vadd.f32 %v601_v29, %v599_v62 }
 0x139   :  { %603 = vst [vmem:[#allocation3] sm:$0x1] %v602_v8 }
 0x13a   :  { %640 = shalt.err (!%p637_p4)
}
 0x13b   :  { %s641_s17 = scalar_lea.hbm %s984_s5, 16 }
 0x13c   :  { %p642_p5 = scmp.ne.s32.totalorder %s984_s5, %s641_s17  ;;  %p645_p6 = scmp.lt.u32.totalorder %s641_s17, %s984_s5 }
 0x13e   :  { %p647_p7 = pnand %p645_p6, %p642_p5 }
 0x140   :  { %650 = shalt.err (!%p647_p7)
}
 0x141   :  { %613 = dma.vmem_to_hbm [thread:$0]  %s611_s12, 16, %s984_s5, [#allocation4]  }
 0x142   :  { %651 = dma.done.wait [#allocation4], 16  }
 0x143   :  { %652 = vsyncadd [#allocation4], 4294967280 }
 0x144   :  { %617 = vsyncpa [#allocation4], 1 }

</bundles_post_ra>
